<compile_context>
chip_gen: v5e
topology: v5e:2x2
jax: 0.10.0
libtpu: 0.0.40
codegen_flags: <defaults>
</compile_context>

<pallas_src>
import functools

import jax
import jax.numpy as jnp
from jax.experimental import pallas as pl
from jax.experimental.pallas import tpu as pltpu


# ----------------------------------------------------------------------------
# small helpers
# ----------------------------------------------------------------------------
def _round_up(x, m):
    return ((x + m - 1) // m) * m


def _cdiv(a, b):
    return -(-a // b)


def _sublane_multiple(dtype):
    size = jnp.dtype(dtype).itemsize
    if size >= 4:
        return 8
    if size == 2:
        return 16
    return 32


def _split_dim(d, max_tile, align):
    """Return (tile, padded_total) so padded_total % tile == 0, tile % align == 0."""
    dal = _round_up(max(d, 1), align)
    if dal <= max_tile:
        return dal, dal
    nblk = _cdiv(dal, max_tile)
    tile = _round_up(_cdiv(dal, nblk), align)
    return tile, tile * nblk


def _vmem_capacity_bytes():
    try:
        info = pltpu.get_tpu_info()
        cap = getattr(info, "vmem_capacity_bytes", None)
        if cap:
            return int(cap)
    except Exception:
        pass
    return 64 * 1024 * 1024  # conservative floor (v7x per-TensorCore VMEM)


_VMEM_CAP = _vmem_capacity_bytes()


# ----------------------------------------------------------------------------
# kernels
# ----------------------------------------------------------------------------
def _linear_kernel_single(x_ref, w_ref, b_ref, o_ref):
    # Single K block: one-shot dot + bias, no accumulator, no phase logic.
    acc = jnp.dot(x_ref[...], w_ref[...], preferred_element_type=jnp.float32)
    o_ref[...] = (acc + b_ref[...].astype(jnp.float32)).astype(o_ref.dtype)


def _linear_kernel_acc_inplace(x_ref, w_ref, b_ref, o_ref):
    # f32 output: accumulate directly into the resident output tile.
    k = pl.program_id(2)

    @pl.when(k == 0)
    def _init():
        o_ref[...] = jnp.zeros_like(o_ref)

    o_ref[...] += jnp.dot(x_ref[...], w_ref[...], preferred_element_type=jnp.float32)

    @pl.when(k == pl.num_programs(2) - 1)
    def _finalize():
        o_ref[...] += b_ref[...]  # bias added exactly once


def _linear_kernel_acc_scratch(x_ref, w_ref, b_ref, o_ref, acc_ref):
    # Narrow (e.g. bf16) output: accumulate in an f32 VMEM scratch, cast once.
    k = pl.program_id(2)

    @pl.when(k == 0)
    def _init():
        acc_ref[...] = jnp.zeros_like(acc_ref)

    acc_ref[...] += jnp.dot(x_ref[...], w_ref[...], preferred_element_type=jnp.float32)

    @pl.when(k == pl.num_programs(2) - 1)
    def _finalize():
        o_ref[...] = (acc_ref[...] + b_ref[...].astype(jnp.float32)).astype(o_ref.dtype)


# ----------------------------------------------------------------------------
# forward (weight already padded+transposed to (K, N), bias padded to (1, N))
# ----------------------------------------------------------------------------
def _encoder_forward_padded(x, w_p, b_p, *, d_in, d_hid, tn, tk):
    if x.ndim == 1:
        x = x[:, None]  # unsqueeze(-1): implies input_dim == 1
    B, d_in_x = x.shape
    assert d_in_x == d_in, (x.shape, d_in)
    K, N = w_p.shape

    # --- M tiling: dtype-aware sublane rounding, up to 512 rows ------------
    sub = _sublane_multiple(x.dtype)
    tm, M = _split_dim(B, 512, sub)

    # --- pad the activations (zero K-padding contributes 0 to the sum) -----
    if (M, K) != (B, d_in):
        x_p = jnp.zeros((M, K), x.dtype).at[:B, :d_in].set(x)
    else:
        x_p = x

    out_dtype = x.dtype
    itm = jnp.dtype(x.dtype).itemsize
    out_itm = jnp.dtype(out_dtype).itemsize

    gm, gn, gk = M // tm, N // tn, K // tk

    # --- VMEM budget: double-buffered operands + resident output/accum -----
    step_bytes = 2 * (tm * tk * itm + tk * tn * itm + tn * itm) + 2 * tm * tn * out_itm
    use_scratch = gk > 1 and jnp.dtype(out_dtype) != jnp.dtype(jnp.float32)
    if use_scratch:
        step_bytes += tm * tn * 4
    vmem_limit = int(min(max(2 * step_bytes, 32 * 1024 * 1024), int(0.75 * _VMEM_CAP)))
    vmem_limit = max(vmem_limit, step_bytes + (2 << 20))

    cost = pl.CostEstimate(
        flops=2 * M * N * K,
        transcendentals=0,
        bytes_accessed=M * K * itm + K * N * itm + N * itm + M * N * out_itm,
    )

    if gk == 1:
        # ---- single-block-K fast path: 2-D grid, no accumulator ----------
        grid = (gm, gn)
        kernel = _linear_kernel_single
        in_specs = [
            pl.BlockSpec((tm, tk), lambda i, j: (i, 0)),  # x tile
            pl.BlockSpec((tk, tn), lambda i, j: (0, j)),  # weight tile (K, N)
            pl.BlockSpec((1, tn), lambda i, j: (0, j)),   # bias row
        ]
        out_spec = pl.BlockSpec((tm, tn), lambda i, j: (i, j))
        scratch = ()
        dims = ("parallel", "parallel")
    else:
        grid = (gm, gn, gk)
        in_specs = [
            pl.BlockSpec((tm, tk), lambda i, j, k: (i, k)),
            pl.BlockSpec((tk, tn), lambda i, j, k: (k, j)),
            pl.BlockSpec((1, tn), lambda i, j, k: (0, j)),
        ]
        out_spec = pl.BlockSpec((tm, tn), lambda i, j, k: (i, j))
        dims = ("parallel", "parallel", "arbitrary")
        if use_scratch:
            kernel = _linear_kernel_acc_scratch
            scratch = (pltpu.VMEM((tm, tn), jnp.float32),)
        else:
            kernel = _linear_kernel_acc_inplace
            scratch = ()

    out = pl.pallas_call(
        kernel,
        out_shape=jax.ShapeDtypeStruct((M, N), out_dtype),
        grid_spec=pltpu.PrefetchScalarGridSpec(
            num_scalar_prefetch=0,
            grid=grid,
            in_specs=in_specs,
            out_specs=out_spec,
            scratch_shapes=list(scratch),
        ),
        compiler_params=pltpu.CompilerParams(
            dimension_semantics=dims,
            vmem_limit_bytes=vmem_limit,
        ),
        cost_estimate=cost,
    )(x_p, w_p, b_p)

    # Slice padded result back to the logical (B, hidden_dim) shape.
    return out[:B, :d_hid]


# ----------------------------------------------------------------------------
# module-like wrapper: pads/transposes the weight ONCE at construction time
# ----------------------------------------------------------------------------
class PallasEncoder:
    """Pallas equivalent of Encoder(input_dim, hidden_dim) given its params."""

    def __init__(self, weight, bias):
        d_hid, d_in = weight.shape
        assert bias.shape == (d_hid,), (bias.shape, d_hid)
        self.d_hid, self.d_in = d_hid, d_in

        # N / tn: lane-dense output blocks; when hidden_dim > 256 ensure at
        # least 2 N blocks so both v7x TensorCores get work (also fine on
        # single-TC v5e/v6e).
        n128 = _round_up(d_hid, 128)
        if n128 <= 256:
            tn, N = n128, n128
        else:
            nblk = max(2, _cdiv(n128, 512))
            tn = _round_up(_cdiv(n128, nblk), 128)
            N = tn * nblk

        # K / tk: big K streams (up to 1024) -> few accumulator passes.
        tk, K = _split_dim(d_in, 1024, 128)

        self.tn, self.N, self.tk, self.K = tn, N, tk, K

        # One-time copy: fold the PyTorch (hidden, in) -> (K, N) transpose
        # into the zero-pad, so the kernel's MXU RHS needs no per-step vxpose
        # and no padded-weight rebuild happens on the per-call path.
        w_t = weight.T
        if (K, N) != (d_in, d_hid):
            w_p = jnp.zeros((K, N), weight.dtype).at[:d_in, :d_hid].set(w_t)
        else:
            w_p = w_t
        if N != d_hid:
            b_p = jnp.zeros((N,), bias.dtype).at[:d_hid].set(bias)
        else:
            b_p = bias
        self.w_p = w_p
        self.b_p = b_p.reshape(1, N)

        self._fwd = jax.jit(
            functools.partial(
                _encoder_forward_padded, d_in=d_in, d_hid=d_hid, tn=tn, tk=tk
            )
        )

    def __call__(self, x):
        # TODO(synk): for d_in == 1 / tiny shapes a plain VPU/XLA outer-product
        # is faster than an MXU pass; kept on the Pallas path for coverage.
        return self._fwd(x, self.w_p, self.b_p)


# ----------------------------------------------------------------------------
# reference + self-test
# ----------------------------------------------------------------------------
def _reference(x, weight, bias):
    if x.ndim == 1:
        x = x[:, None]
    return (
        x.astype(jnp.float32) @ weight.T.astype(jnp.float32)
        + bias.astype(jnp.float32)[None, :]
    )


if __name__ == "__main__":
    key = jax.random.PRNGKey(0)
    ks = jax.random.split(key, 12)

    # --- Case 1: module defaults (input_dim=16, hidden_dim=128), 2-D input --
    #     -> single-block fast path (grid (1, 1)).
    B, d_in, d_hid = 8, 16, 128
    x = jax.random.normal(ks[0], (B, d_in), dtype=jnp.float32)
    bound = 1.0 / (d_in ** 0.5)
    w = jax.random.uniform(ks[1], (d_hid, d_in), minval=-bound, maxval=bound,
                           dtype=jnp.float32)
    b = jax.random.uniform(ks[2], (d_hid,), minval=-bound, maxval=bound,
                           dtype=jnp.float32)
    enc = PallasEncoder(w, b)
    y = jax.block_until_ready(enc(x))
    assert y.shape == (B, d_hid)
    assert jnp.allclose(y, _reference(x, w, b), atol=1e-5, rtol=1e-5)

    # --- Case 2: 1-D input (unsqueeze path), input_dim=1, hidden_dim=32 -----
    N1d, hid2 = 8, 32
    x1d = jax.random.normal(ks[3], (N1d,), dtype=jnp.float32)
    w2 = jax.random.uniform(ks[4], (hid2, 1), minval=-1.0, maxval=1.0,
                            dtype=jnp.float32)
    b2 = jax.random.uniform(ks[5], (hid2,), minval=-1.0, maxval=1.0,
                            dtype=jnp.float32)
    enc2 = PallasEncoder(w2, b2)
    y2 = jax.block_until_ready(enc2(x1d))
    assert y2.shape == (N1d, hid2)
    assert jnp.allclose(y2, _reference(x1d, w2, b2), atol=1e-5, rtol=1e-5)

    # --- Case 3: multi-K / multi-N grid, f32 in-place accumulation path -----
    B3, d_in3, d_hid3 = 8, 2304, 384
    x3 = jax.random.normal(ks[6], (B3, d_in3), dtype=jnp.float32)
    bound3 = 1.0 / (d_in3 ** 0.5)
    w3 = jax.random.uniform(ks[7], (d_hid3, d_in3), minval=-bound3, maxval=bound3,
                            dtype=jnp.float32)
    b3 = jax.random.uniform(ks[8], (d_hid3,), minval=-bound3, maxval=bound3,
                            dtype=jnp.float32)
    enc3 = PallasEncoder(w3, b3)
    y3 = jax.block_until_ready(enc3(x3))
    assert y3.shape == (B3, d_hid3)
    assert jnp.allclose(y3, _reference(x3, w3, b3), atol=1e-4, rtol=1e-4)

    # --- Case 4: bf16 inputs, multi-K -> f32-scratch accumulation path ------
    B4, d_in4, d_hid4 = 16, 1536, 256
    bound4 = 1.0 / (d_in4 ** 0.5)
    x4 = jax.random.normal(ks[9], (B4, d_in4), dtype=jnp.float32).astype(jnp.bfloat16)
    w4 = jax.random.uniform(ks[10], (d_hid4, d_in4), minval=-bound4, maxval=bound4,
                            dtype=jnp.float32).astype(jnp.bfloat16)
    b4 = jax.random.uniform(ks[11], (d_hid4,), minval=-bound4, maxval=bound4,
                            dtype=jnp.float32).astype(jnp.bfloat16)
    enc4 = PallasEncoder(w4, b4)
    y4 = jax.block_until_ready(enc4(x4))
    assert y4.shape == (B4, d_hid4)
    assert y4.dtype == jnp.bfloat16  # output dtype follows input (PyTorch bf16 semantics)
    assert jnp.allclose(y4.astype(jnp.float32), _reference(x4, w4, b4),
                        atol=5e-2, rtol=5e-2)

    print("KERNEL_OK")
</pallas_src>

<mosaic_0001>
module attributes {stable_mosaic.version = 11 : i64} {
  func.func @_linear_kernel_single(%arg0: i32, %arg1: i32, %arg2: memref<8x128xf32, #tpu.memory_space<vmem>>, %arg3: memref<128x128xf32, #tpu.memory_space<vmem>>, %arg4: memref<1x128xf32, #tpu.memory_space<vmem>>, %arg5: memref<8x128xf32, #tpu.memory_space<vmem>>) attributes {dimension_semantics = [#tpu.dimension_semantics<parallel>, #tpu.dimension_semantics<parallel>], iteration_bounds = array<i64: 1, 1>, scalar_prefetch = 0 : i64, scratch_operands = 0 : i64, tpu.core_type = #tpu.core_type<tc>, window_params = [{transform_indices = @transform_0, window_bounds = array<i64: 8, 128>}, {transform_indices = @transform_1, window_bounds = array<i64: 128, 128>}, {transform_indices = @transform_2, window_bounds = array<i64: 1, 128>}, {transform_indices = @transform_3, window_bounds = array<i64: 8, 128>}]} {
    %c0 = arith.constant 0 : index
    %c0_0 = arith.constant 0 : index
    %0 = vector.load %arg2[%c0, %c0_0] : memref<8x128xf32, #tpu.memory_space<vmem>>, vector<8x128xf32>
    %c0_1 = arith.constant 0 : index
    %c0_2 = arith.constant 0 : index
    %1 = vector.load %arg3[%c0_1, %c0_2] : memref<128x128xf32, #tpu.memory_space<vmem>>, vector<128x128xf32>
    %cst = arith.constant dense<0.000000e+00> : vector<8x128xf32>
    %2 = tpu.matmul %0, %1, %cst {dimension_numbers = #tpu.dot_dimension_numbers<[1], [0], [0], [1], [0, 0, 1, 1], [], []>} : vector<8x128xf32>, vector<128x128xf32>, vector<8x128xf32> -> vector<8x128xf32>
    %c0_3 = arith.constant 0 : index
    %c0_4 = arith.constant 0 : index
    %3 = vector.load %arg4[%c0_3, %c0_4] : memref<1x128xf32, #tpu.memory_space<vmem>>, vector<1x128xf32>
    %4 = vector.broadcast %3 : vector<1x128xf32> to vector<8x128xf32>
    %5 = arith.addf %2, %4 : vector<8x128xf32>
    %c0_5 = arith.constant 0 : index
    %c0_6 = arith.constant 0 : index
    %6 = vector.load %arg5[%c0_5, %c0_6] : memref<8x128xf32, #tpu.memory_space<vmem>>, vector<8x128xf32>
    tpu.vector_store %arg5[%c0_5, %c0_6], %5 {strides = array<i32>} : memref<8x128xf32, #tpu.memory_space<vmem>>, vector<8x128xf32>,
    return
  }
  func.func @transform_0(%arg0: i32, %arg1: i32) -> (i32, i32) {
    %c0_i32 = arith.constant 0 : i32
    %c0_i32_0 = arith.constant 0 : i32
    return %arg0, %c0_i32 : i32, i32
  }
  func.func @transform_1(%arg0: i32, %arg1: i32) -> (i32, i32) {
    %c0_i32 = arith.constant 0 : i32
    %c0_i32_0 = arith.constant 0 : i32
    return %c0_i32, %arg1 : i32, i32
  }
  func.func @transform_2(%arg0: i32, %arg1: i32) -> (i32, i32) {
    %c0_i32 = arith.constant 0 : i32
    %c0_i32_0 = arith.constant 0 : i32
    return %c0_i32, %arg1 : i32, i32
  }
  func.func @transform_3(%arg0: i32, %arg1: i32) -> (i32, i32) {
    %c0_i32 = arith.constant 0 : i32
    return %arg0, %arg1 : i32, i32
  }
}

</mosaic_0001>

<bundles_post_ra>
// kernel: _encoder_forward_padded.1
= control target key start
LH: loop header
LB: loop body
LE: loop exit
PB: predicated region body
PF: predicated region fallthrough
CT: control target
= control target key end

     0   :  { %8 = vsyncpa [#allocation3], 0  ;;  %s183_s0 = inlined_call_operand.vmem [shape: f32[8,128], index: 0, kind: input, shape index: {}]   ;;  %s184_s1 = inlined_call_operand.hbm [shape: f32[128,128], index: 1, kind: input, shape index: {}]   ;;  %s185_s2 = inlined_call_operand.vmem [shape: f32[1,128], index: 2, kind: input, shape index: {}]   ;;  %s186_s3 = inlined_call_operand.hbm [shape: f32[8,128], index: 3, kind: output, shape index: {}]  }
   0x1   :  { %9 = vsyncpa [#allocation4], 0  ;;  %s16_s14 = sshll.u32 %s184_s1, 4  ;;  %s147_s15 = smov [#allocation2]   ;;  %s17_s14 = int_to_ptr.hbm [resolvable:$true] %s16_s14 }
   0x2   :  { %s18_s16 = sshll.u32 %s147_s15, 4  ;;  %s148_s17 = smov 128   ;;  %s19_s16 = int_to_ptr.vmem [resolvable:$true] %s18_s16 }
   0x3   :  { %s149_s18 = smov 8  }
   0x4   :  { %24 = dma.hbm_to_vmem [thread:$0]  %s17_s14, 2048, %s19_s16, [#allocation3], %s148_s17, %s148_s17, %s149_s18  }
   0x5   :  { %143 = dma.done.wait [#allocation3], 2048  }
   0x6   :  { %144 = vsyncadd [#allocation3], 4294965248  ;;  %v47_v0 = vld [vmem:[#allocation2 + $0x78] sm:$0xff]  ;;  %v46_v1 = vld [vmem:[#allocation2 + $0x70] sm:$0xff]  ;;  %s150_s22 = smov [#allocation5]   ;;  %s80_s26 = sshll.u32 %s186_s3, 4  ;;  %s81_s26 = int_to_ptr.hbm [resolvable:$true] %s80_s26 }
   0x7   :  { %52 = vmatpush.msra.mxu0 %v47_v0  ;;  %v45_v2 = vld [vmem:[#allocation2 + $0x68] sm:$0xff]  ;;  %v44_v3 = vld [vmem:[#allocation2 + $0x60] sm:$0xff]  ;;  %v43_v4 = vld [vmem:[#allocation2 + $0x58] sm:$0xff]  ;;  %s78_s23 = sshll.u32 %s150_s22, 4  ;;  %s79_s23 = int_to_ptr.vmem [resolvable:$true] %s78_s23 }
   0x8   :  { %v42_v5 = vld [vmem:[#allocation2 + $0x50] sm:$0xff]  ;;  %v41_v6 = vld [vmem:[#allocation2 + $0x48] sm:$0xff]  ;;  %v40_v7 = vld [vmem:[#allocation2 + $0x40] sm:$0xff] }
   0x9   :  { %53 = vmatpush.msra.mxu0 %v46_v1  ;;  %v39_v8 = vld [vmem:[#allocation2 + $0x38] sm:$0xff]  ;;  %v38_v9 = vld [vmem:[#allocation2 + $0x30] sm:$0xff]  ;;  %v37_v10 = vld [vmem:[#allocation2 + $0x28] sm:$0xff] }
   0xa   :  { %v36_v11 = vld [vmem:[#allocation2 + $0x20] sm:$0xff]  ;;  %v35_v12 = vld [vmem:[#allocation2 + $0x18] sm:$0xff]  ;;  %v34_v13 = vld [vmem:[#allocation2 + $0x10] sm:$0xff] }
   0xb   :  { %54 = vmatpush.msra.mxu0 %v45_v2  ;;  %v33_v14 = vld [vmem:[#allocation2 + $0x8] sm:$0xff]  ;;  %v32_v15 = vld [vmem:[#allocation2] sm:$0xff] }
   0xc   :  { %v31_v16 = vld [vmem:[%s183_s0] sm:$0xff] }
   0xd   :  { %55 = vmatpush.msra.mxu0 %v44_v3  ;;  %v94_v17 = vld [vmem:[%s185_s2] ss:$0 sm:$0xff] }
   0xf   :  { %56 = vmatpush.msra.mxu0 %v43_v4 }
  0x11   :  { %57 = vmatpush.msra.mxu0 %v42_v5 }
  0x13   :  { %58 = vmatpush.msra.mxu0 %v41_v6 }
  0x15   :  { %59 = vmatpush.msra.mxu0 %v40_v7 }
  0x17   :  { %60 = vmatpush.msra.mxu0 %v39_v8 }
  0x19   :  { %61 = vmatpush.msra.mxu0 %v38_v9 }
  0x1b   :  { %62 = vmatpush.msra.mxu0 %v37_v10 }
  0x1d   :  { %63 = vmatpush.msra.mxu0 %v36_v11 }
  0x1f   :  { %64 = vmatpush.msra.mxu0 %v35_v12 }
  0x21   :  { %65 = vmatpush.msra.mxu0 %v34_v13 }
  0x23   :  { %66 = vmatpush.msra.mxu0 %v33_v14 }
  0x25   :  { %67 = vmatpush.msra.mxu0 %v32_v15 }
  0x26   :  { %68 = vmatmul.f32.vlgmr.msra.gmra.mxu0 %v31_v16 }
  0xa3   :  { %v69_v18 = vpop.f32.mrf.mxu0 }
  0xa4   :  { %v70_v19 = vadd.f32 %v94_v17, %v69_v18 }
  0xa6   :  { %72 = vst [vmem:[#allocation5] sm:$0xff] %v70_v19 }
  0xa7   :  { %83 = dma.vmem_to_hbm [thread:$0]  %s79_s23, 128, %s81_s26, [#allocation4]  }
  0xa8   :  { %145 = dma.done.wait [#allocation4], 128  }
  0xa9   :  { %146 = vsyncadd [#allocation4], 4294967168 }
  0xaa   :  { %88 = vsyncpa [#allocation3], 1 }
  0xab   :  { %89 = vsyncpa [#allocation4], 1 }

</bundles_post_ra>
